<compile_context>
chip_gen: v7x
topology: tpu7x:2x2x1
jax: 0.10.0
libtpu: 0.0.40
codegen_flags: <defaults>
</compile_context>

<pallas_src>
import functools

import jax
import jax.numpy as jnp
from jax.experimental import pallas as pl
from jax.experimental.pallas import tpu as pltpu


def _cosine_rows_kernel(inv_temp_ref, a_ref, b_ref, o_ref, *, eps, use_mxu):
    """Per row-tile: cosine_similarity(a_i, b_i) / temp, as a (TN, 1) column."""
    a = a_ref[...].astype(jnp.float32)
    b = b_ref[...].astype(jnp.float32)

    if use_mxu:
        # Small D: do the lane reduction on the idle MXU instead of the XLU.
        d = a.shape[-1]
        ones = jnp.ones((d, 1), dtype=jnp.float32)
        dot = jnp.dot(a * b, ones, preferred_element_type=jnp.float32)  # (TN,1)
        sa = jnp.dot(a * a, ones, preferred_element_type=jnp.float32)   # (TN,1)
        sb = jnp.dot(b * b, ones, preferred_element_type=jnp.float32)   # (TN,1)
    else:
        dot = jnp.sum(a * b, axis=-1, keepdims=True)                    # (TN,1)
        sa = jnp.sum(a * a, axis=-1, keepdims=True)                     # (TN,1)
        sb = jnp.sum(b * b, axis=-1, keepdims=True)                     # (TN,1)

    # 1 / max(sqrt(sa*sb), eps) == rsqrt(max(sa*sb, eps^2))  -> EUP slot.
    inv_norm = jax.lax.rsqrt(jnp.maximum(sa * sb, eps * eps))
    inv_temp = inv_temp_ref[0]  # runtime scalar from SMEM

    o_ref[...] = (dot * inv_norm * inv_temp).astype(o_ref.dtype)


def _row_tile(n, d, itemsize, target_block_bytes):
    """Byte-budgeted row tile (multiple of 8); ragged last block is masked."""
    if n <= 8:
        return n  # block dim == full array dim is always legal
    rows = target_block_bytes // max(1, d * itemsize)
    tn = max(8, (min(rows, n) // 8) * 8)
    if tn >= n and n >= 16:
        # Force >= 2 grid steps so the "parallel" row axis can be split
        # across v7x's two TensorCores (and keeps DMA/compute overlap).
        tn = max(8, (-(-((n + 1) // 2) // 8)) * 8)
    return tn


def cosine_similarity_scaled(a, b, temp, *, eps=1e-8,
                             target_block_bytes=3 * 1024 * 1024):
    """cosine_similarity(a, b, dim=-1) / temp  -> (N, 1), computed in Pallas."""
    assert a.shape == b.shape and a.ndim == 2
    n, d = a.shape
    out_dtype = jnp.promote_types(a.dtype, b.dtype)
    in_itemsize = jnp.dtype(a.dtype).itemsize
    out_itemsize = jnp.dtype(out_dtype).itemsize

    tn = _row_tile(n, d, in_itemsize, target_block_bytes)
    grid = (pl.cdiv(n, tn),)

    # Runtime scalar (one sld from SMEM): no recompile when temp changes.
    inv_temp = jnp.reshape(1.0 / jnp.asarray(temp, dtype=jnp.float32), (1,))

    kernel = functools.partial(_cosine_rows_kernel,
                               eps=float(eps),
                               use_mxu=(d <= 256))

    cost = pl.CostEstimate(
        flops=6 * n * d,              # 3 elementwise muls + 3 row reductions
        transcendentals=n,            # one rsqrt per row
        bytes_accessed=2 * n * d * in_itemsize + n * out_itemsize,
    )

    return pl.pallas_call(
        kernel,
        out_shape=jax.ShapeDtypeStruct((n, 1), out_dtype),
        grid=grid,
        in_specs=[
            pl.BlockSpec(memory_space=pltpu.MemorySpace.SMEM),  # inv_temp
            pl.BlockSpec((tn, d), lambda i: (i, 0)),            # a row tile
            pl.BlockSpec((tn, d), lambda i: (i, 0)),            # b row tile
        ],
        out_specs=pl.BlockSpec((tn, 1), lambda i: (i, 0)),
        compiler_params=pltpu.CompilerParams(
            dimension_semantics=("parallel",),
        ),
        cost_estimate=cost,
    )(inv_temp, a, b)


def similarity_diag(a, b, temp, *, eps=1e-8):
    """Pallas equivalent of Similarity_diag.forward(a, b) -> (N*N, 1)."""
    cos = cosine_similarity_scaled(a, b, temp, eps=eps)
    # Plain-JAX glue to match torch.diag(...).view(-1, 1) exactly.
    # NOTE: this materializes an O(N^2) mostly-zero matrix; if the downstream
    # consumer only needs the diagonal, call cosine_similarity_scaled()
    # directly and skip this line (it, not the kernel, dominates for large N).
    return jnp.diag(cos[:, 0]).reshape(-1, 1)


def _reference(a, b, temp, eps=1e-8):
    a32 = a.astype(jnp.float32)
    b32 = b.astype(jnp.float32)
    dot = jnp.sum(a32 * b32, axis=-1)
    na = jnp.linalg.norm(a32, axis=-1)
    nb = jnp.linalg.norm(b32, axis=-1)
    cos = dot / jnp.maximum(na * nb, eps) / temp
    return jnp.diag(cos).reshape(-1, 1)


if __name__ == "__main__":
    # The module's only parameter is the temperature.
    TEMP = 0.05

    key = jax.random.PRNGKey(0)
    ka, kb = jax.random.split(key)

    # Small paired-embedding batch (spec shapes).
    N, D = 8, 32
    a = jax.random.normal(ka, (N, D), dtype=jnp.float32)
    b = jax.random.normal(kb, (N, D), dtype=jnp.float32)

    out = jax.block_until_ready(similarity_diag(a, b, TEMP))
    ref = _reference(a, b, TEMP)
    assert out.shape == (N * N, 1), out.shape
    assert jnp.allclose(out, ref, atol=1e-4, rtol=1e-4), "mismatch vs reference"

    # Exercise the ragged-grid (cdiv + masked last block) path as well.
    N2, D2 = 20, 96
    a2 = jax.random.normal(ka, (N2, D2), dtype=jnp.float32)
    b2 = jax.random.normal(kb, (N2, D2), dtype=jnp.float32)
    cos2 = jax.block_until_ready(cosine_similarity_scaled(a2, b2, TEMP))
    ref2 = _reference(a2, b2, TEMP)
    assert cos2.shape == (N2, 1), cos2.shape
    assert jnp.allclose(cos2[:, 0], jnp.diag(ref2.reshape(N2, N2)),
                        atol=1e-4, rtol=1e-4), "ragged-grid mismatch"

    print("KERNEL_OK")
</pallas_src>

<mosaic_0001>
module attributes {stable_mosaic.version = 11 : i64} {
  func.func @_cosine_rows_kernel(%arg0: i32, %arg1: memref<1xf32, #tpu.memory_space<smem>>, %arg2: memref<8x32xf32, #tpu.memory_space<vmem>>, %arg3: memref<8x32xf32, #tpu.memory_space<vmem>>, %arg4: memref<8x1xf32, #tpu.memory_space<vmem>>) attributes {dimension_semantics = [#tpu.dimension_semantics<parallel>], iteration_bounds = array<i64: 1>, scalar_prefetch = 0 : i64, scratch_operands = 0 : i64, tpu.core_type = #tpu.core_type<tc>, window_params = [{transform_indices = @transform_0, window_bounds = array<i64: 1>}, {transform_indices = @transform_1, window_bounds = array<i64: 8, 32>}, {transform_indices = @transform_2, window_bounds = array<i64: 8, 32>}, {transform_indices = @transform_3, window_bounds = array<i64: 8, 1>}]} {
    %c0 = arith.constant 0 : index
    %c0_0 = arith.constant 0 : index
    %0 = vector.load %arg2[%c0, %c0_0] : memref<8x32xf32, #tpu.memory_space<vmem>>, vector<8x32xf32>
    %c0_1 = arith.constant 0 : index
    %c0_2 = arith.constant 0 : index
    %1 = vector.load %arg3[%c0_1, %c0_2] : memref<8x32xf32, #tpu.memory_space<vmem>>, vector<8x32xf32>
    %cst = arith.constant 1.000000e+00 : f32
    %2 = vector.broadcast %cst : f32 to vector<32x1xf32>
    %3 = arith.mulf %0, %1 : vector<8x32xf32>
    %cst_3 = arith.constant dense<0.000000e+00> : vector<8x1xf32>
    %4 = tpu.matmul %3, %2, %cst_3 {dimension_numbers = #tpu.dot_dimension_numbers<[1], [0], [0], [1], [0, 0, 1, 1], [], []>} : vector<8x32xf32>, vector<32x1xf32>, vector<8x1xf32> -> vector<8x1xf32>
    %5 = arith.mulf %0, %0 : vector<8x32xf32>
    %cst_4 = arith.constant dense<0.000000e+00> : vector<8x1xf32>
    %6 = tpu.matmul %5, %2, %cst_4 {dimension_numbers = #tpu.dot_dimension_numbers<[1], [0], [0], [1], [0, 0, 1, 1], [], []>} : vector<8x32xf32>, vector<32x1xf32>, vector<8x1xf32> -> vector<8x1xf32>
    %7 = arith.mulf %1, %1 : vector<8x32xf32>
    %cst_5 = arith.constant dense<0.000000e+00> : vector<8x1xf32>
    %8 = tpu.matmul %7, %2, %cst_5 {dimension_numbers = #tpu.dot_dimension_numbers<[1], [0], [0], [1], [0, 0, 1, 1], [], []>} : vector<8x32xf32>, vector<32x1xf32>, vector<8x1xf32> -> vector<8x1xf32>
    %9 = arith.mulf %6, %8 : vector<8x1xf32>
    %cst_6 = arith.constant 1.000000e-16 : f32
    %10 = vector.broadcast %cst_6 : f32 to vector<8x1xf32>
    %11 = arith.maximumf %9, %10 : vector<8x1xf32>
    %12 = math.rsqrt %11 : vector<8x1xf32>
    %c0_7 = arith.constant 0 : index
    %13 = memref.load %arg1[%c0_7] : memref<1xf32, #tpu.memory_space<smem>>
    %14 = arith.mulf %4, %12 : vector<8x1xf32>
    %15 = vector.broadcast %13 : f32 to vector<8x1xf32>
    %16 = arith.mulf %14, %15 : vector<8x1xf32>
    %c0_8 = arith.constant 0 : index
    %c0_9 = arith.constant 0 : index
    %17 = vector.load %arg4[%c0_8, %c0_9] : memref<8x1xf32, #tpu.memory_space<vmem>>, vector<8x1xf32>
    tpu.vector_store %arg4[%c0_8, %c0_9], %16 {strides = array<i32>} : memref<8x1xf32, #tpu.memory_space<vmem>>, vector<8x1xf32>,
    return
  }
  func.func @transform_0(%arg0: i32) -> i32 {
    %c0_i32 = arith.constant 0 : i32
    %c0_i32_0 = arith.constant 0 : i32
    return %c0_i32 : i32
  }
  func.func @transform_1(%arg0: i32) -> (i32, i32) {
    %c0_i32 = arith.constant 0 : i32
    %c0_i32_0 = arith.constant 0 : i32
    return %arg0, %c0_i32 : i32, i32
  }
  func.func @transform_2(%arg0: i32) -> (i32, i32) {
    %c0_i32 = arith.constant 0 : i32
    %c0_i32_0 = arith.constant 0 : i32
    return %arg0, %c0_i32 : i32, i32
  }
  func.func @transform_3(%arg0: i32) -> (i32, i32) {
    %c0_i32 = arith.constant 0 : i32
    %c0_i32_0 = arith.constant 0 : i32
    return %arg0, %c0_i32 : i32, i32
  }
}

</mosaic_0001>

<bundles_post_ra>
// kernel: tpu_custom_call.1
= control target key start
LH: loop header
LB: loop body
LE: loop exit
PB: predicated region body
PF: predicated region fallthrough
CT: control target
= control target key end

     0   :  { %9 = vsyncpa [#allocation4], 0  ;;  %s457_s0 = inlined_call_operand.<no memory space> [shape: f32[1], index: 0, kind: input, shape index: {}]   ;;  %s458_s1 = inlined_call_operand.hbm [shape: f32[8,32], index: 1, kind: input, shape index: {}]   ;;  %s459_s2 = inlined_call_operand.hbm [shape: f32[8,32], index: 2, kind: input, shape index: {}]   ;;  %s460_s3 = inlined_call_operand.vmem [shape: f32[8,1], index: 3, kind: output, shape index: {}]  }
   0x1   :  { %10 = vsyncpa [#allocation6], 0  ;;  %s398_s12 = smov [#allocation3]   ;;  %s399_s14 = smov [#allocation5]  }
   0x2   :  { %s19_s13 = sshll.u32 %s398_s12, 4  ;;  %s29_s15 = sshll.u32 %s399_s14, 4  ;;  %s20_s13 = int_to_ptr.vmem [resolvable:$true] %s19_s13  ;;  %s30_s15 = int_to_ptr.vmem [resolvable:$true] %s29_s15 }
   0x3   :  { %s350_s18 = scalar_lea.hbm %s458_s1, 128 }
   0x4   :  { %p351_p0 = scmp.ne.s32.totalorder %s458_s1, %s350_s18  ;;  %p354_p1 = scmp.lt.u32.totalorder %s350_s18, %s458_s1 }
   0x6   :  { %p356_p2 = pnand %p354_p1, %p351_p0 }
   0x8   :  { %359 = shalt.err (!%p356_p2)
}
   0x9   :  { %s360_s23 = scalar_lea.vmem %s20_s13, 128  ;;  %p365_p4 = scmp.lt.s32.totalorder %s20_s13, %s20_s13 }
   0xa   :  { %p361_p3 = scmp.ne.s32.totalorder %s20_s13, %s360_s23  ;;  %p366_p5 = scmp.lt.s32.totalorder %s360_s23, %s360_s23 }
   0xc   :  { %p367_p6 = por %p366_p5, %p365_p4 }
   0xe   :  { %p368_p7 = pnand %p367_p6, %p361_p3 }
  0x10   :  { %371 = shalt.err (!%p368_p7)
}
  0x11   :  { %22 = dma.hbm_to_vmem [thread:$0]  %s458_s1, 128, %s20_s13, [#allocation4]  }
  0x12   :  { %s372_s28 = scalar_lea.hbm %s459_s2, 128 }
  0x13   :  { %p373_p8 = scmp.ne.s32.totalorder %s459_s2, %s372_s28  ;;  %p376_p9 = scmp.lt.u32.totalorder %s372_s28, %s459_s2 }
  0x15   :  { %p378_p10 = pnand %p376_p9, %p373_p8 }
  0x17   :  { %381 = shalt.err (!%p378_p10)
}
  0x18   :  { %s382_s6 = scalar_lea.vmem %s30_s15, 128  ;;  %p387_p12 = scmp.lt.s32.totalorder %s30_s15, %s30_s15 }
  0x19   :  { %p383_p11 = scmp.ne.s32.totalorder %s30_s15, %s382_s6  ;;  %p388_p13 = scmp.lt.s32.totalorder %s382_s6, %s382_s6 }
  0x1b   :  { %p389_p0 = por %p388_p13, %p387_p12 }
  0x1d   :  { %p390_p1 = pnand %p389_p0, %p383_p11 }
  0x1f   :  { %393 = shalt.err (!%p390_p1)
}
  0x20   :  { %32 = dma.hbm_to_vmem [thread:$0]  %s459_s2, 128, %s30_s15, [#allocation6]  }
  0x21   :  { %394 = dma.done.wait [#allocation4], 128  }
  0x22   :  { %395 = vsyncadd [#allocation4], 4294967168 }
  0x23   :  { %396 = dma.done.wait [#allocation6], 128  }
  0x24   :  { %397 = vsyncadd [#allocation6], 4294967168  ;;  %v400_v0 = vmov 0.0|0.0   ;;  %v401_v1 = vmov 1.0|1.0   ;;  %vm402_vm0 = vmmov 0   ;;  %v269_v17 = vstv %s457_s0 }
  0x25   :  { %330 = vmatprep.subr.bf16.mxu0 %v400_v0  ;;  %334 = vmatprep.subr.bf16.mxu1 %v400_v0  ;;  %v403_v2 = vmov 0.0   ;;  %v39_v3 = vld [vmem:[#allocation3] sm:$0xff]  ;;  %v40_v4 = vld [vmem:[#allocation5] sm:$0xff]  ;;  %vm42_vm1 = vcmask 261120   ;;  %vm271_vm2 = vcmask 7168  }
  0x26   :  { %331 = vmatpush3.bf16.msra.mxu0 %v401_v1  ;;  %305 = vmatprep.mubr.msk.f32.mxu0 %vm402_vm0, %v403_v2  ;;  %v41_v5 = vmul.f32 %v40_v4, %v39_v3  ;;  %v116_v6 = vmul.f32 %v39_v3, %v39_v3  ;;  %v190_v7 = vmul.f32 %v40_v4, %v40_v4 }
  0x27   :  { %332 = vmatprep.subr.bf16.mxu0 %v400_v0  ;;  %335 = vmatpush3.bf16.msra.mxu1 %v401_v1 }
  0x28   :  { %336 = vmatprep.subr.bf16.mxu1 %v400_v0  ;;  %316 = vmatprep.mubr.msk.f32.mxu1 %vm402_vm0, %v403_v2 }
  0x2a   :  { %333 = vmatpush3.bf16.msra.mxu0 %v401_v1 }
  0x2b   :  { %338 = vmatprep.subr.bf16.mxu0 %v400_v0  ;;  %337 = vmatpush3.bf16.msra.mxu1 %v401_v1 }
  0x2d   :  { %306 = vmatmul.mubr.msk.f32.vlgmr.msra.gmra.mrb[0].mxu0 %vm42_vm1, %v41_v5 }
  0x2e   :  { %317 = vmatmul.mubr.msk.f32.vlgmr.msra.gmra.mrb[0].mxu1 %vm42_vm1, %v116_v6  ;;  %339 = vmatpush3.bf16.msra.mxu0 %v401_v1 }
  0x2f   :  { %327 = vmatprep.mubr.msk.f32.mxu0 %vm402_vm0, %v403_v2  ;;  %340 = vmatprep.subr.bf16.mxu0 %v400_v0 }
  0x32   :  { %341 = vmatpush3.bf16.msra.mxu0 %v401_v1 }
  0x35   :  { %328 = vmatmul.mubr.msk.f32.vlgmr.msra.gmra.mrb[2].mxu0 %vm42_vm1, %v190_v7 }
 0x100   :  { %v112_v8 = vpop.f32.mrb[0].mxu0 }
 0x101   :  { %v186_v9 = vpop.f32.mrb[0].mxu1  ;;  %v307_v10 = vpop.f32.mrb[1].mxu0 }
 0x102   :  { %v318_v11 = vpop.f32.mrb[1].mxu1 }
 0x108   :  { %v260_v12 = vpop.f32.mrb[2].mxu0 }
 0x109   :  { %v264_v13 = vmul.f32 %v260_v12, %v186_v9  ;;  %v329_v14 = vpop.f32.mrb[3].mxu0 }
 0x10b   :  { %v265_v15 = vmax.f32 %v264_v13, 1e-16 }
 0x10d   :  { %348 = vrsqrt.f32 %v265_v15 }
 0x117   :  { %v349_v16 = vpop.eup %348 }
 0x118   :  { %v268_v18 = vmul.f32 %v349_v16, %v112_v8 }
 0x11a   :  { %v270_v19 = vmul.f32 %v269_v17, %v268_v18 }
 0x11c   :  { %272 = vst.msk [vmem:[%s460_s3] sm:$0xff] %vm271_vm2, %v270_v19 }
 0x11d   :  { %277 = vsyncpa [#allocation4], 1 }
 0x11e   :  { %278 = vsyncpa [#allocation6], 1 }

</bundles_post_ra>
